<compile_context>
chip_gen: v7x
topology: tpu7x:2x2x1
jax: 0.10.0
libtpu: 0.0.40
codegen_flags: <defaults>
</compile_context>

<pallas_src>
import math

import jax
import jax.numpy as jnp
from jax import lax
from jax.experimental import pallas as pl
from jax.experimental.pallas import tpu as pltpu

_INV_SQRT2 = 1.0 / math.sqrt(2.0)


def _ffn_kernel(x_ref, w1_ref, b1_ref, w2_ref, b2_ref, o_ref):
    # x_ref : (C_in, TS)  native dtype   w1_ref: (HID, C_in)   b1_ref: (HID, 1)
    # w2_ref: (C_out, HID)               b2_ref: (C_out, 1)    o_ref : (C_out, TS)
    x = x_ref[...].astype(w1_ref.dtype)          # in-kernel cast: no extra HBM pass
    h = jnp.dot(w1_ref[...], x, preferred_element_type=jnp.float32) + b1_ref[...]
    # exact (erf-based) GELU, matching torch.nn.GELU default; f32 elementwise
    h = 0.5 * h * (1.0 + lax.erf(h * _INV_SQRT2))
    # dropout p = 0.0 -> identity (omitted)
    h = h.astype(w2_ref.dtype)                   # bf16 operand into second MXU matmul
    o = jnp.dot(w2_ref[...], h, preferred_element_type=jnp.float32) + b2_ref[...]
    o_ref[...] = o.astype(o_ref.dtype)


def ffn_pallas(x_nchw, w1, b1, w2, b2, *, tile_s=None,
               compute_dtype=jnp.bfloat16, out_dtype=None):
    """FFN = Conv1x1 -> GELU -> (dropout p=0) -> Conv1x1 -> (dropout p=0).

    x_nchw : (B, C_in, H, W)       (kept at native dtype; cast happens in-kernel)
    w1     : (HID,  C_in)  PyTorch Conv2d weight with the 1x1 squeezed (out, in)
    b1     : (HID,)
    w2     : (C_out, HID)
    b2     : (C_out,)
    returns (B, C_out, H, W), dtype `out_dtype` (default: x.dtype).

    Note: when weights are static across calls, jit a closure over (w1, b1, w2, b2)
    so the small bf16 weight casts below are hoisted out of the per-call path.
    """
    B, C_in, H, W = x_nchw.shape
    HID = w1.shape[0]
    C_out = w2.shape[0]
    S = H * W
    out_dtype = out_dtype or x_nchw.dtype

    in_bytes = jnp.dtype(x_nchw.dtype).itemsize
    out_bytes = jnp.dtype(out_dtype).itemsize
    cd_bytes = jnp.dtype(compute_dtype).itemsize

    # NCHW is already "channels x pixels" per batch: reshape only, no transpose,
    # no dtype conversion (that would be an extra HBM pass on a mem-bound op).
    x3 = x_nchw.reshape(B, C_in, S)

    # Spatial (lane) tile: ~1 MiB of x per block, multiple of 256 (MXU width on
    # v6e/v7x), never wider than needed for S.
    if tile_s is None:
        target_bytes = 1 << 20
        tile_s = max(256, (target_bytes // max(1, C_in * in_bytes)) // 256 * 256)
    tile_s = max(128, (tile_s // 128) * 128)
    tile_s = min(tile_s, max(128, pl.cdiv(S, 128) * 128))
    # Keep >= 2 parallel grid steps when possible (v7x has 2 TensorCores).
    while B * pl.cdiv(S, tile_s) < 2 and tile_s > 128:
        tile_s = max(128, (tile_s // 2) // 128 * 128)

    num_s = pl.cdiv(S, tile_s)     # ragged last block handled by Pallas masking
    grid = (B, num_s)

    w1c = w1.astype(compute_dtype)
    w2c = w2.astype(compute_dtype)
    b1c = b1.reshape(HID, 1).astype(jnp.float32)
    b2c = b2.reshape(C_out, 1).astype(jnp.float32)

    # VMEM budget: double-buffered x/out blocks + (double-buffered) weights +
    # the live f32/bf16 intermediate.  Cap at 48 MiB (safe on v7x's 64 MiB).
    w_bytes = (HID * C_in + C_out * HID) * cd_bytes + (HID + C_out) * 4
    blk_bytes = tile_s * (C_in * in_bytes + C_out * out_bytes)
    h_bytes = tile_s * HID * (4 + cd_bytes)
    vmem_need = 2 * blk_bytes + 2 * w_bytes + h_bytes
    vmem_limit = int(min(max(2 * vmem_need, 32 << 20), 48 << 20))

    cost = pl.CostEstimate(
        flops=2 * B * S * (C_in * HID + HID * C_out),
        transcendentals=B * S * HID,
        bytes_accessed=(B * C_in * S * in_bytes
                        + B * C_out * S * out_bytes
                        + w1c.size * cd_bytes + w2c.size * cd_bytes
                        + b1c.size * 4 + b2c.size * 4),
    )

    out3 = pl.pallas_call(
        _ffn_kernel,
        out_shape=jax.ShapeDtypeStruct((B, C_out, S), out_dtype),
        grid_spec=pltpu.PrefetchScalarGridSpec(
            num_scalar_prefetch=0,
            grid=grid,
            in_specs=[
                pl.BlockSpec((None, C_in, tile_s), lambda b, s: (b, 0, s)),
                pl.BlockSpec((HID, C_in), lambda b, s: (0, 0)),
                pl.BlockSpec((HID, 1), lambda b, s: (0, 0)),
                pl.BlockSpec((C_out, HID), lambda b, s: (0, 0)),
                pl.BlockSpec((C_out, 1), lambda b, s: (0, 0)),
            ],
            out_specs=pl.BlockSpec((None, C_out, tile_s), lambda b, s: (b, 0, s)),
        ),
        compiler_params=pltpu.CompilerParams(
            dimension_semantics=("parallel", "parallel"),
            vmem_limit_bytes=vmem_limit,
        ),
        cost_estimate=cost,
    )(x3, w1c, b1c, w2c, b2c)

    return out3.reshape(B, C_out, H, W)


def init_ffn_params(key, in_features, hidden_features=None, out_features=None):
    """trunc_normal(std=0.02) weights in PyTorch conv (out, in) layout, zero bias."""
    hidden_features = hidden_features or in_features
    out_features = out_features or in_features
    k1, k2 = jax.random.split(key)
    std = 0.02
    w1 = jax.random.truncated_normal(
        k1, -2.0, 2.0, (hidden_features, in_features), jnp.float32) * std
    w2 = jax.random.truncated_normal(
        k2, -2.0, 2.0, (out_features, hidden_features), jnp.float32) * std
    b1 = jnp.zeros((hidden_features,), jnp.float32)
    b2 = jnp.zeros((out_features,), jnp.float32)
    return w1, b1, w2, b2


if __name__ == "__main__":
    key = jax.random.PRNGKey(0)
    kx, kp = jax.random.split(key)

    B, C, H, W = 2, 4, 16, 16
    HID = 32

    x = jax.random.normal(kx, (B, C, H, W), jnp.float32)
    w1, b1, w2, b2 = init_ffn_params(kp, in_features=C, hidden_features=HID)

    out = jax.block_until_ready(ffn_pallas(x, w1, b1, w2, b2))

    # Reference: same math on the same bf16-operand / f32-accumulate path, plain JAX.
    xb = x.astype(jnp.bfloat16)
    rows = jnp.transpose(xb, (0, 2, 3, 1)).reshape(-1, C)
    h = jnp.dot(rows, w1.astype(jnp.bfloat16).T,
                preferred_element_type=jnp.float32) + b1
    h = 0.5 * h * (1.0 + lax.erf(h * _INV_SQRT2))
    o = jnp.dot(h.astype(jnp.bfloat16), w2.astype(jnp.bfloat16).T,
                preferred_element_type=jnp.float32) + b2
    ref = jnp.transpose(o.reshape(B, H, W, -1), (0, 3, 1, 2)).astype(out.dtype)

    assert out.shape == (B, C, H, W), out.shape
    max_err = float(jnp.max(jnp.abs(out.astype(jnp.float32) - ref.astype(jnp.float32))))
    assert jnp.allclose(out.astype(jnp.float32), ref.astype(jnp.float32),
                        atol=1e-4, rtol=1e-3), f"max_err={max_err}"

    print("KERNEL_OK")
</pallas_src>

<mosaic_0001>
module attributes {stable_mosaic.version = 11 : i64} {
  func.func @_ffn_kernel(%arg0: i32, %arg1: i32, %arg2: memref<1x4x256xf32, #tpu.memory_space<vmem>>, %arg3: memref<32x4xbf16, #tpu.memory_space<vmem>>, %arg4: memref<32x1xf32, #tpu.memory_space<vmem>>, %arg5: memref<4x32xbf16, #tpu.memory_space<vmem>>, %arg6: memref<4x1xf32, #tpu.memory_space<vmem>>, %arg7: memref<1x4x256xf32, #tpu.memory_space<vmem>>) attributes {dimension_semantics = [#tpu.dimension_semantics<parallel>, #tpu.dimension_semantics<parallel>], iteration_bounds = array<i64: 2, 1>, scalar_prefetch = 0 : i64, scratch_operands = 0 : i64, tpu.core_type = #tpu.core_type<tc>, window_params = [{transform_indices = @transform_0, window_bounds = array<i64: 1, 4, 256>}, {pipeline_mode = #tpu.pipeline_mode<synchronous>, transform_indices = @transform_1, window_bounds = array<i64: 32, 4>}, {pipeline_mode = #tpu.pipeline_mode<synchronous>, transform_indices = @transform_2, window_bounds = array<i64: 32, 1>}, {pipeline_mode = #tpu.pipeline_mode<synchronous>, transform_indices = @transform_3, window_bounds = array<i64: 4, 32>}, {pipeline_mode = #tpu.pipeline_mode<synchronous>, transform_indices = @transform_4, window_bounds = array<i64: 4, 1>}, {transform_indices = @transform_5, window_bounds = array<i64: 1, 4, 256>}]} {
    %c0 = arith.constant 0 : index
    %c0_0 = arith.constant 0 : index
    %c0_1 = arith.constant 0 : index
    %0 = vector.load %arg2[%c0, %c0_0, %c0_1] : memref<1x4x256xf32, #tpu.memory_space<vmem>>, vector<1x4x256xf32>
    %1 = vector.shape_cast %0 : vector<1x4x256xf32> to vector<4x256xf32>
    %2 = arith.truncf %1 : vector<4x256xf32> to vector<4x256xbf16>
    %c0_2 = arith.constant 0 : index
    %c0_3 = arith.constant 0 : index
    %3 = vector.load %arg3[%c0_2, %c0_3] : memref<32x4xbf16, #tpu.memory_space<vmem>>, vector<32x4xbf16>
    %cst = arith.constant dense<0.000000e+00> : vector<32x256xf32>
    %4 = tpu.matmul %3, %2, %cst {dimension_numbers = #tpu.dot_dimension_numbers<[1], [0], [0], [1], [0, 0, 1, 1], [], []>} : vector<32x4xbf16>, vector<4x256xbf16>, vector<32x256xf32> -> vector<32x256xf32>
    %c0_4 = arith.constant 0 : index
    %c0_5 = arith.constant 0 : index
    %5 = vector.load %arg4[%c0_4, %c0_5] : memref<32x1xf32, #tpu.memory_space<vmem>>, vector<32x1xf32>
    %6 = vector.broadcast %5 : vector<32x1xf32> to vector<32x256xf32>
    %7 = arith.addf %4, %6 : vector<32x256xf32>
    %cst_6 = arith.constant 5.000000e-01 : f32
    %8 = vector.broadcast %cst_6 : f32 to vector<32x256xf32>
    %9 = arith.mulf %8, %7 : vector<32x256xf32>
    %cst_7 = arith.constant 0.707106769 : f32
    %10 = vector.broadcast %cst_7 : f32 to vector<32x256xf32>
    %11 = arith.mulf %7, %10 : vector<32x256xf32>
    %12 = math.erf %11 : vector<32x256xf32>
    %cst_8 = arith.constant 1.000000e+00 : f32
    %13 = vector.broadcast %cst_8 : f32 to vector<32x256xf32>
    %14 = arith.addf %13, %12 : vector<32x256xf32>
    %15 = arith.mulf %9, %14 : vector<32x256xf32>
    %16 = arith.truncf %15 : vector<32x256xf32> to vector<32x256xbf16>
    %c0_9 = arith.constant 0 : index
    %c0_10 = arith.constant 0 : index
    %17 = vector.load %arg5[%c0_9, %c0_10] : memref<4x32xbf16, #tpu.memory_space<vmem>>, vector<4x32xbf16>
    %cst_11 = arith.constant dense<0.000000e+00> : vector<4x256xf32>
    %18 = tpu.matmul %17, %16, %cst_11 {dimension_numbers = #tpu.dot_dimension_numbers<[1], [0], [0], [1], [0, 0, 1, 1], [], []>} : vector<4x32xbf16>, vector<32x256xbf16>, vector<4x256xf32> -> vector<4x256xf32>
    %c0_12 = arith.constant 0 : index
    %c0_13 = arith.constant 0 : index
    %19 = vector.load %arg6[%c0_12, %c0_13] : memref<4x1xf32, #tpu.memory_space<vmem>>, vector<4x1xf32>
    %20 = vector.broadcast %19 : vector<4x1xf32> to vector<4x256xf32>
    %21 = arith.addf %18, %20 : vector<4x256xf32>
    %c0_14 = arith.constant 0 : index
    %c0_15 = arith.constant 0 : index
    %c0_16 = arith.constant 0 : index
    %22 = vector.load %arg7[%c0_14, %c0_15, %c0_16] : memref<1x4x256xf32, #tpu.memory_space<vmem>>, vector<1x4x256xf32>
    %23 = vector.shape_cast %22 : vector<1x4x256xf32> to vector<4x256xf32>
    %24 = vector.shape_cast %21 : vector<4x256xf32> to vector<1x4x256xf32>
    tpu.vector_store %arg7[%c0_14, %c0_15, %c0_16], %24 {strides = array<i32>} : memref<1x4x256xf32, #tpu.memory_space<vmem>>, vector<1x4x256xf32>,
    return
  }
  func.func @transform_0(%arg0: i32, %arg1: i32) -> (i32, i32, i32) {
    %c0_i32 = arith.constant 0 : i32
    %c0_i32_0 = arith.constant 0 : i32
    return %arg0, %c0_i32, %arg1 : i32, i32, i32
  }
  func.func @transform_1(%arg0: i32, %arg1: i32) -> (i32, i32) {
    %c0_i32 = arith.constant 0 : i32
    %c0_i32_0 = arith.constant 0 : i32
    %c0_i32_1 = arith.constant 0 : i32
    return %c0_i32, %c0_i32_0 : i32, i32
  }
  func.func @transform_2(%arg0: i32, %arg1: i32) -> (i32, i32) {
    %c0_i32 = arith.constant 0 : i32
    %c0_i32_0 = arith.constant 0 : i32
    %c0_i32_1 = arith.constant 0 : i32
    return %c0_i32, %c0_i32_0 : i32, i32
  }
  func.func @transform_3(%arg0: i32, %arg1: i32) -> (i32, i32) {
    %c0_i32 = arith.constant 0 : i32
    %c0_i32_0 = arith.constant 0 : i32
    %c0_i32_1 = arith.constant 0 : i32
    return %c0_i32, %c0_i32_0 : i32, i32
  }
  func.func @transform_4(%arg0: i32, %arg1: i32) -> (i32, i32) {
    %c0_i32 = arith.constant 0 : i32
    %c0_i32_0 = arith.constant 0 : i32
    %c0_i32_1 = arith.constant 0 : i32
    return %c0_i32, %c0_i32_0 : i32, i32
  }
  func.func @transform_5(%arg0: i32, %arg1: i32) -> (i32, i32, i32) {
    %c0_i32 = arith.constant 0 : i32
    %c0_i32_0 = arith.constant 0 : i32
    return %arg0, %c0_i32, %arg1 : i32, i32, i32
  }
}

</mosaic_0001>

<bundles_post_ra>
// kernel: tpu_custom_call.1
= control target key start
LH: loop header
LB: loop body
LE: loop exit
PB: predicated region body
PF: predicated region fallthrough
CT: control target
= control target key end

     0   :  { %10 = vsyncpa [#allocation3], 0  ;;  %s906_s0 = inlined_call_operand.vmem [shape: f32[2,4,256], index: 0, kind: input, shape index: {}]   ;;  %s907_s1 = inlined_call_operand.vmem [shape: bf16[32,4], index: 1, kind: input, shape index: {}]   ;;  %s908_s2 = inlined_call_operand.vmem [shape: f32[32,1], index: 2, kind: input, shape index: {}]   ;;  %s909_s3 = inlined_call_operand.vmem [shape: bf16[4,32], index: 3, kind: input, shape index: {}]   ;;  %s910_s4 = inlined_call_operand.vmem [shape: f32[4,1], index: 4, kind: input, shape index: {}]   ;;  %s911_s5 = inlined_call_operand.hbm [shape: f32[2,4,256], index: 5, kind: output, shape index: {}]  }
   0x1   :  { %12 = vsyncpa [#allocation3 + $0x1], 0  ;;  %s770_s18 = smov 0   ;;  %s772_s19 = smov 0  }
   0x2   :  { %s774_s20 = smov 0   ;;  %s776_s21 = smov 0  }
   0x3   :  { %s778_s22 = smov 0   ;;  %s780_s23 = smov 0  }
   0x4 LB: > { %s560_s24 = sadd.s32 4294967295, %s736_s23   ;;  %s561_s25 = sadd.s32 4294967294, %s736_s23   ;;  %s736_s23 = sphi %s780_s23, %s18_s23   ;;  %s732_s22 = sphi %s778_s22, %s918_s22   ;;  %s728_s21 = sphi %s776_s21, %s917_s21   ;;  %s724_s20 = sphi %s774_s20, %s916_s20   ;;  %s720_s19 = sphi %s772_s19, %s915_s19   ;;  %s716_s18 = sphi %s770_s18, %s914_s18  }
   0x5   : > { %s30_s26 = sadd.s32 1, %s732_s22  ;;  %s151_s27 = sadd.s32 1, %s724_s20 }
   0x6   : > { %p32_p0 = scmp.ge.s32.totalorder %s30_s26, 2  ;;  %p161_p1 = scmp.ne.s32.totalorder %s724_s20, %s720_s19 }
   0x7   : > { %p162_p2 = scmp.eq.s32.totalorder %s560_s24, 1  ;;  %p167_p3 = scmp.ne.s32.totalorder %s720_s19, %s716_s18 }
   0x8   : > { %s920_s26 = smov (%p32_p0, %s30_s26), 0  ;;  %p168_p5 = scmp.eq.s32.totalorder %s561_s25, 1 }
   0x9   : > { %p810_p4 = por %p162_p2, %p161_p1  ;;  %s146_s29 = ssub.s32 %s732_s22, %s920_s26 }
   0xa   : > { %p564_p6 = scmp.ge.s32.totalorder %s736_s23, 1  ;;  %p149_p7 = scmp.eq.s32.totalorder %s146_s29, 0 }
   0xb   : > { %p817_p8 = por %p168_p5, %p167_p3  ;;  %p211_p9 = scmp.lt.s32.totalorder %s736_s23, 3 }
   0xc   : > { %s823_s6 = scalar_select %p149_p7, %s724_s20, %s151_s27  }
   0xd   : > { %p212_p10 = pnand %p564_p6, %p211_p9 }
   0xe   : > { %p244_p11 = scmp.lt.s32.totalorder (!%p212_p10), %s728_s21, 1  ;;  %v738_v0 = vmov (!%p212_p10), 0   ;;  %v265_v1 = vld [vmem:[%s908_s2] sm:$0xff] (!%p212_p10)  ;;  %v267_v2 = vld [vmem:[%s908_s2 + $0x10] sm:$0xff] (!%p212_p10)  ;;  %v266_v3 = vld [vmem:[%s908_s2 + $0x8] sm:$0xff] (!%p212_p10)  ;;  %vm306_vm0 = vcmask (!%p212_p10), 1041408  }
   0xf   : > { %215 = sbr.rel (%p212_p10) target bundleno = 514 (0x202), region = 40  ;;  %345 = vmatprep.mubr.bf16.mxu0 (!%p212_p10), %v738_v0  ;;  %637 = vset.pattern.permute.xlu0 (!%p212_p10), %v738_v0  ;;  %v268_v4 = vld [vmem:[%s908_s2 + $0x18] sm:$0xff] (!%p212_p10)  ;;  %v411_v8 = vld [vmem:[%s910_s4] sm:$0xf] (!%p212_p10)  ;;  %vm299_vm1 = vcmask (!%p212_p10), 31744   ;;  %v641_v12 = vld [vmem:[%s907_s1 + $0x8] sm:$0xff] (!%p212_p10)  }
  0x10   : > { %638 = vset.pattern.permute.xlu1 (!%p212_p10), %v738_v0  ;;  %453 = vmatprep.mubr.bf16.mxu1 (!%p212_p10), %v738_v0  ;;  %v640_v11 = vld [vmem:[%s907_s1] sm:$0xff] (!%p212_p10)   ;;  %vm417_vm2 = vcmask (!%p212_p10), 261120   ;;  %s240_s13 = sand.u32 (!%p212_p10), 1, %s720_s19   ;;  %s580_s15 = sshll.u32 (!%p212_p10), %s728_s21, 7 }
  0x11   : > { %271 = vperm.xlu0 (!%p212_p10), %637, %v265_v1   ;;  %281 = vperm.xlu1 (!%p212_p10), %638, %v267_v2   ;;  %s565_s14 = sshll.u32 (!%p212_p10), %s240_s13, 3  ;;  %s859_s27 = scalar_lea.hbm (!%p212_p10), %s911_s5, %s580_s15 }
  0x12   : > { %s242_s16 = scalar_lea.vmem (!%p212_p10), [#allocation2], %s565_s14  ;;  %s468_s29 = scalar_lea.sflag (!%p212_p10), [#allocation3], %s240_s13 }
  0x15   : > { %276 = vperm.xlu0 (!%p212_p10), %637, %v266_v3   ;;  %286 = vperm.xlu1 (!%p212_p10), %638, %v268_v4  }
  0x16   : > { %s245_s7 = scalar_select %p244_p11, %s728_s21, 1 }
  0x17   : > { %s739_s21 = smov [#allocation2]  }
  0x18   : > { %s579_s12 = sshll.u32 %s245_s7, 3  ;;  %s662_s8 = sshll.u32 %s739_s21, 4  ;;  %s663_s8 = int_to_ptr.vmem [resolvable:$false] %s662_s8 }
  0x19   : > { %s251_s17 = scalar_lea.vmem %s906_s0, %s579_s12  ;;  %414 = vperm.xlu0 %637, %v411_v8   ;;  %s664_s9 = scalar_lea.vmem %s663_s8, 256 }
  0x1a   : > { %v255_v5 = vld [vmem:[%s251_s17] sm:$0xff]  ;;  %s484_s17 = sshll.u32 %s242_s16, 4  ;;  %s861_s17 = int_to_ptr.vmem [resolvable:$true] %s484_s17 }
  0x1b   : > { %v257_v6 = vcombine.high %v255_v5, %v255_v5  ;;  %v259_v7 = vpack.c.bf16 %v255_v5, %v255_v5  ;;  %s658_s7 = scalar_lea.vmem %s861_s17, 128  ;;  %p665_p1 = scmp.lt.s32.totalorder %s861_s17, %s663_s8 }
  0x1c   : > { %p659_p12 = scmp.ne.s32.totalorder %s861_s17, %s658_s7  ;;  %p666_p2 = scmp.lt.s32.totalorder %s664_s9, %s658_s7 }
  0x1d   : > { %v260_v9 = vpack.c.bf16 %v257_v6, %v257_v6  ;;  %v308_v10 = vsel %vm306_vm0, %v259_v7, 0 }
  0x1e   : > { %p660_p13 = pnand %p659_p12, %p810_p4  ;;  %p667_p3 = por %p666_p2, %p665_p1 }
  0x1f   : > { %570 = vmatprep.subr.msk.bf16.mxu0 %vm306_vm0, %v260_v9 }
  0x20   : > { %314 = vmatpush1.bf16.msra.mxu0 %v308_v10  ;;  %p661_p0 = pneg %p660_p13 }
  0x22   : > { %p668_p5 = pnand %p667_p3, %p661_p0 }
  0x23   : > { %571 = vmatmul.mubr.msk.bf16.vlgmr.msra.gmra.mrb[0].mxu0 %vm299_vm1, %v640_v11 }
  0x24   : > { %355 = vmatprep.mubr.bf16.mxu0 %v738_v0 }
  0x2b   : > { %572 = vmatmul.mubr.msk.bf16.gmra.mrb[4].mxu0 %vm299_vm1, %v641_v12 }
  0x90   : > { %v272_v13 = vpop.permute.xlu0 %271  ;;  %v282_v24 = vpop.permute.xlu1 %281 }
  0x94   : > { %v277_v17 = vpop.permute.xlu0 %276  ;;  %v287_v31 = vpop.permute.xlu1 %286 }
  0xf6   : > { %v347_v14 = vpop.f32.mrb[0].mxu0 }
  0xf7   : > { %v348_v15 = vadd.f32 %v347_v14, %v272_v13  ;;  %v349_v16 = vpop.f32.mrb[1].mxu0  ;;  %v415_v14 = vpop.permute.xlu0 %414 }
  0xf8   : > { %v350_v18 = vadd.f32 %v349_v16, %v272_v13  ;;  %v351_v19 = vpop.f32.mrb[2].mxu0  ;;  %v410_v13 = vld [vmem:[%s909_s3] sm:$0x3] }
  0xf9   : > { %v374_v20 = vmul.f32 0.70710677, %v348_v15  ;;  %v352_v21 = vadd.f32 %v351_v19, %v277_v17  ;;  %v353_v22 = vpop.f32.mrb[3].mxu0  ;;  %v366_v47 = vmul.f32 0.5, %v348_v15 }
  0xfa   : > { %v375_v23 = vmul.f32 0.70710677, %v350_v18  ;;  %v354_v25 = vadd.f32 %v353_v22, %v277_v17  ;;  %v367_v50 = vmul.f32 0.5, %v350_v18 }
  0xfb   : > { %642 = verf.f32 %v374_v20  ;;  %v376_v26 = vmul.f32 0.70710677, %v352_v21  ;;  %v368_v48 = vmul.f32 0.5, %v352_v21 }
  0xfc   : > { %644 = verf.f32 %v375_v23  ;;  %v377_v27 = vmul.f32 0.70710677, %v354_v25  ;;  %v369_v51 = vmul.f32 0.5, %v354_v25 }
  0xfd   : > { %646 = verf.f32 %v376_v26 }
  0xfe   : > { %648 = verf.f32 %v377_v27  ;;  %v357_v28 = vpop.f32.mrb[4].mxu0 }
  0xff   : > { %v358_v29 = vadd.f32 %v357_v28, %v282_v24  ;;  %v359_v30 = vpop.f32.mrb[5].mxu0 }
 0x100   : > { %v360_v32 = vadd.f32 %v359_v30, %v282_v24  ;;  %v361_v33 = vpop.f32.mrb[6].mxu0 }
 0x101   : > { %v378_v34 = vmul.f32 0.70710677, %v358_v29  ;;  %v362_v35 = vadd.f32 %v361_v33, %v287_v31  ;;  %v363_v36 = vpop.f32.mrb[7].mxu0  ;;  %v370_v1 = vmul.f32 0.5, %v358_v29 }
 0x102   : > { %v379_v37 = vmul.f32 0.70710677, %v360_v32  ;;  %v364_v38 = vadd.f32 %v363_v36, %v287_v31  ;;  %v371_v4 = vmul.f32 0.5, %v360_v32 }
 0x103   : > { %650 = verf.f32 %v378_v34  ;;  %v380_v39 = vmul.f32 0.70710677, %v362_v35  ;;  %v372_v2 = vmul.f32 0.5, %v362_v35 }
 0x104   : > { %652 = verf.f32 %v379_v37  ;;  %v381_v40 = vmul.f32 0.70710677, %v364_v38  ;;  %v373_v5 = vmul.f32 0.5, %v364_v38 }
 0x105   : > { %v643_v41 = vpop.eup %642  ;;  %654 = verf.f32 %v380_v39 }
 0x106   : > { %v645_v42 = vpop.eup %644  ;;  %656 = verf.f32 %v381_v40  ;;  %v390_v43 = vadd.f32 1.0, %v643_v41 }
 0x107   : > { %v647_v44 = vpop.eup %646  ;;  %v391_v45 = vadd.f32 1.0, %v645_v42 }
 0x108   : > { %v649_v46 = vpop.eup %648  ;;  %v392_v49 = vadd.f32 1.0, %v647_v44  ;;  %v398_v53 = vmul.f32 %v390_v43, %v366_v47 }
 0x109   : > { %v393_v52 = vadd.f32 1.0, %v649_v46  ;;  %v399_v55 = vmul.f32 %v391_v45, %v367_v50 }
 0x10a   : > { %v400_v54 = vmul.f32 %v392_v49, %v368_v48 }
 0x10b   : > { %v401_v56 = vmul.f32 %v393_v52, %v369_v51 }
 0x10c   : > { %v406_v57 = vpack.c.bf16 %v400_v54, %v398_v53 }
 0x10d   : > { %v651_v58 = vpop.eup %650  ;;  %v407_v59 = vpack.c.bf16 %v401_v56, %v399_v55 }
 0x10e   : > { %v653_v60 = vpop.eup %652  ;;  %v394_v61 = vadd.f32 1.0, %v651_v58 }
 0x10f   : > { %v655_v62 = vpop.eup %654  ;;  %v395_v63 = vadd.f32 1.0, %v653_v60  ;;  %421 = vmatprep.subr.bf16.mxu1 %v407_v59 }
 0x110   : > { %v657_v0 = vpop.eup %656  ;;  %v396_v3 = vadd.f32 1.0, %v655_v62  ;;  %422 = vmatpush1.bf16.msra.mxu1 %v406_v57  ;;  %v402_v7 = vmul.f32 %v394_v61, %v370_v1 }
 0x111   : > { %v397_v6 = vadd.f32 1.0, %v657_v0  ;;  %v403_v9 = vmul.f32 %v395_v63, %v371_v4 }
 0x112   : > { %v404_v8 = vmul.f32 %v396_v3, %v372_v2 }
 0x113   : > { %v405_v10 = vmul.f32 %v397_v6, %v373_v5 }
 0x114   : > { %v408_v11 = vpack.c.bf16 %v404_v8, %v402_v7 }
 0x115   : > { %v409_v12 = vpack.c.bf16 %v405_v10, %v403_v9 }
 0x117   : > { %423 = vmatprep.subr.bf16.mxu1 %v409_v12 }
 0x118   : > { %424 = vmatpush1.bf16.msra.mxu1 %v408_v11 }
 0x11b   : > { %573 = vmatmul.mubr.msk.bf16.vlgmr.msra.gmra.mrb[0].mxu1 %vm417_vm2, %v410_v13 }
 0x1ee   : > { %v455_v15 = vpop.f32.mrb[0].mxu1 }
 0x1ef   : > { %v456_v16 = vadd.f32 %v455_v15, %v415_v14  ;;  %v457_v17 = vpop.f32.mrb[1].mxu1 }
 0x1f0   : > { %v458_v18 = vadd.f32 %v457_v17, %v415_v14  ;;  %v459_v19 = vpop.f32.mrb[2].mxu1 }
 0x1f1   : > { %v460_v20 = vpop.f32.mrb[3].mxu1 }
 0x1f2   : > { %v464_v21 = vcombine.low %v456_v16, %v458_v18 }
 0x1f4   : > { %466 = vst [vmem:[%s242_s16] sm:$0xff] %v464_v21 }
 0x1f5   : > { %671 = shalt.err (!%p668_p5)
}
 0x1f6   : > { %s672_s10 = scalar_lea.hbm %s859_s27, 128  ;;  %s676_s13 = scalar_lea.hbm %s911_s5, 256 }
 0x1f7   : > { %p673_p6 = scmp.ne.s32.totalorder %s859_s27, %s672_s10  ;;  %p677_p10 = scmp.lt.u32.totalorder %s859_s27, %s911_s5 }
 0x1f8   : > { %p678_p11 = scmp.lt.u32.totalorder %s676_s13, %s672_s10  ;;  %p680_p13 = scmp.lt.u32.totalorder %s672_s10, %s859_s27 }
 0x1f9   : > { %p674_p7 = pnand %p673_p6, %p810_p4 }
 0x1fa   : > { %p679_p12 = por %p678_p11, %p677_p10 }
 0x1fb   : > { %p675_p9 = pneg %p674_p7 }
 0x1fc   : > { %p681_p0 = por %p680_p13, %p679_p12 }
 0x1fe   : > { %p682_p1 = pnand %p681_p0, %p675_p9 }
 0x200   : > { %685 = shalt.err (!%p682_p1)
}
 0x201   : > { %581 = dma.vmem_to_hbm [thread:$0]  (%p810_p4), %s861_s17, 128, %s859_s27, %s468_s29  }
 0x202 PF: > { %p587_p2 = scmp.ge.s32.totalorder %s736_s23, 2  ;;  %s496_s16 = sand.u32 1, %s716_s18  }
 0x203   : > { %s497_s24 = scalar_lea.sflag [#allocation3], %s496_s16 }
 0x204   : > { %p584_p3 = pnand %p587_p2, %p817_p8 }
 0x206   : > { %711 = dma.done.wait (!%p584_p3), %s497_s24, 128  }
 0x207   : > { %713 = vsyncadd (!%p584_p3), %s497_s24, 4294967168  ;;  %s18_s23 = sadd.s32 1, %s736_s23   ;;  %s914_s18 = smov %s720_s19 }
 0x208   : > { %p15_p5 = scmp.ge.s32.totalorder %s18_s23, 4   ;;  %s915_s19 = smov %s724_s20 }
 0x209   : > { %s916_s20 = smov %s823_s6  ;;  %s917_s21 = smov %s732_s22 }
 0x20a   : > { %s918_s22 = smov %s920_s26  ;;  %17 = sbr.rel (!%p15_p5) target bundleno = 4 (0x4), region = 75 }
 0x211   :  { %502 = vsyncpa [#allocation3], 1 }
 0x212   :  { %504 = vsyncpa [#allocation3 + $0x1], 1 }

</bundles_post_ra>
